<compile_context>
chip_gen: v7x
topology: tpu7x:2x2x1
jax: 0.10.0
libtpu: 0.0.40
codegen_flags: <defaults>
</compile_context>

<pallas_src>
import functools

import jax
import jax.numpy as jnp
from jax.experimental import pallas as pl
from jax.experimental.pallas import tpu as pltpu


def _vmem_limit_bytes():
    cap = None
    try:
        cap = getattr(pltpu.get_tpu_info(), "vmem_capacity_bytes", None)
    except Exception:
        cap = None
    if not cap:
        return 48 * 1024 * 1024               # safe on every generation
    return int(min(cap - 16 * 1024 * 1024, 100 * 1024 * 1024))


_VMEM_LIMIT = _vmem_limit_bytes()


def _pick_tile(dim, target, mult):
    """Largest tile <= target that divides dim and is a multiple of `mult`
    (or the full dim when dim <= target / no such divisor exists)."""
    if dim <= target:
        return dim
    t = (target // mult) * mult
    while t >= mult:
        if dim % t == 0:
            return t
        t -= mult
    return dim


def _weight_spec(tk, tn, buffers):
    """Streamed-weight BlockSpec; deeper buffering when supported/needed."""
    idx = lambda i, j, k: (k, j)
    if buffers and buffers > 2 and hasattr(pl, "Buffered"):
        try:
            return pl.BlockSpec((tk, tn), idx, pipeline_mode=pl.Buffered(buffers))
        except TypeError:
            pass
    return pl.BlockSpec((tk, tn), idx)


# ----------------------------- LayerNorm (apply) -----------------------------
# Only used for the very first LN (on the embedding); every other LN is fused
# into the finalize epilogue of the producing matmul (emit_ln below).

def _ln_apply_kernel(x_ref, g_ref, b_ref, o_ref):
    x = x_ref[...].astype(jnp.float32)
    mu = jnp.mean(x, axis=-1, keepdims=True)
    var = jnp.mean(jnp.square(x - mu), axis=-1, keepdims=True)
    y = (x - mu) * jax.lax.rsqrt(var + 1e-5) * g_ref[...] + b_ref[...]
    o_ref[...] = y.astype(o_ref.dtype)


def layer_norm(x2d, gamma, beta, *, block_m=512):
    M, D = x2d.shape
    tm = _pick_tile(M, block_m, 8)
    return pl.pallas_call(
        _ln_apply_kernel,
        out_shape=jax.ShapeDtypeStruct((M, D), jnp.bfloat16),
        grid=(M // tm,),
        in_specs=[pl.BlockSpec((tm, D), lambda i: (i, 0)),
                  pl.BlockSpec((1, D), lambda i: (0, 0)),
                  pl.BlockSpec((1, D), lambda i: (0, 0))],
        out_specs=pl.BlockSpec((tm, D), lambda i: (i, 0)),
        compiler_params=pltpu.CompilerParams(
            dimension_semantics=("parallel",),
            vmem_limit_bytes=_VMEM_LIMIT),
    )(x2d,
      gamma.astype(jnp.float32).reshape(1, D),
      beta.astype(jnp.float32).reshape(1, D))


# ---------------- generic matmul: bias / GELU / residual / LN-emit -----------

def _mm_kernel(*refs, act, has_res, emit_ln):
    idx = 0
    x_ref = refs[idx]; idx += 1
    w_ref = refs[idx]; idx += 1
    b_ref = refs[idx]; idx += 1
    res_ref = None
    if has_res:
        res_ref = refs[idx]; idx += 1
    g_ref = bb_ref = None
    if emit_ln:
        g_ref = refs[idx]; bb_ref = refs[idx + 1]; idx += 2
    o_ref = refs[idx]; idx += 1
    oln_ref = None
    if emit_ln:
        oln_ref = refs[idx]; idx += 1
    acc_ref = refs[idx]

    k = pl.program_id(2)

    @pl.when(k == 0)
    def _():
        acc_ref[...] = jnp.zeros_like(acc_ref)

    # pure MXU body: no per-(j,k) elementwise prologue (keeps it MXU-bound)
    acc_ref[...] += jnp.dot(x_ref[...], w_ref[...],
                            preferred_element_type=jnp.float32)

    @pl.when(k == pl.num_programs(2) - 1)
    def _():
        y = acc_ref[...] + b_ref[...].astype(jnp.float32)
        if act == "gelu":  # GPT-2 "gelu_new" (tanh approximation), f32 math
            y = 0.5 * y * (1.0 + jnp.tanh(
                0.7978845608028654 * (y + 0.044715 * y * y * y)))
        if has_res:
            y = y + res_ref[...].astype(jnp.float32)
        o_ref[...] = y.astype(o_ref.dtype)
        if emit_ln:
            # LN of the (residual-added) output, computed once on the resident
            # full-row f32 tile -> no standalone ln_stats pass, no LN recompute
            # inside the next matmul's K/N loop.
            mu = jnp.mean(y, axis=-1, keepdims=True)
            var = jnp.mean(jnp.square(y - mu), axis=-1, keepdims=True)
            z = (y - mu) * jax.lax.rsqrt(var + 1e-5)
            z = z * g_ref[...] + bb_ref[...]
            oln_ref[...] = z.astype(oln_ref.dtype)


def fused_matmul(x, w, b, *, act="none", residual=None, emit_ln=None,
                 out_dtype=jnp.bfloat16, block_m=256, block_n=256,
                 block_k=512, weight_buffers=2):
    """o = [+residual] act(x @ w + b); optionally also emits LN(o)."""
    M, K = x.shape
    N = w.shape[1]
    if emit_ln is not None:
        block_n = N            # LN epilogue needs the whole row resident
    tm = _pick_tile(M, block_m, 8)
    tn = _pick_tile(N, block_n, 128)
    tk = _pick_tile(K, block_k, 128)
    if emit_ln is not None and tn != N:
        raise ValueError("emit_ln requires a single N tile")

    n_w_blocks = (K // tk) * (N // tn)
    wspec = _weight_spec(tk, tn,
                         weight_buffers if n_w_blocks >= weight_buffers else 2)

    in_arrays = [x, w, b.astype(jnp.float32).reshape(1, N)]
    in_specs = [pl.BlockSpec((tm, tk), lambda i, j, k: (i, k)),
                wspec,
                pl.BlockSpec((1, tn), lambda i, j, k: (0, j))]
    if residual is not None:
        in_arrays.append(residual)
        in_specs.append(pl.BlockSpec((tm, tn), lambda i, j, k: (i, j)))
    if emit_ln is not None:
        gamma, beta = emit_ln
        in_arrays += [gamma.astype(jnp.float32).reshape(1, N),
                      beta.astype(jnp.float32).reshape(1, N)]
        in_specs += [pl.BlockSpec((1, tn), lambda i, j, k: (0, j)),
                     pl.BlockSpec((1, tn), lambda i, j, k: (0, j))]

    out_shape = jax.ShapeDtypeStruct((M, N), out_dtype)
    out_spec = pl.BlockSpec((tm, tn), lambda i, j, k: (i, j))
    if emit_ln is not None:
        out_shape = (out_shape, jax.ShapeDtypeStruct((M, N), out_dtype))
        out_spec = (out_spec, pl.BlockSpec((tm, tn), lambda i, j, k: (i, j)))

    kernel = functools.partial(_mm_kernel, act=act,
                               has_res=residual is not None,
                               emit_ln=emit_ln is not None)
    return pl.pallas_call(
        kernel,
        out_shape=out_shape,
        grid=(M // tm, N // tn, K // tk),
        in_specs=in_specs,
        out_specs=out_spec,
        scratch_shapes=[pltpu.VMEM((tm, tn), jnp.float32)],
        compiler_params=pltpu.CompilerParams(
            dimension_semantics=("parallel", "parallel", "arbitrary"),
            vmem_limit_bytes=_VMEM_LIMIT),
    )(*in_arrays)


# ---------------- QKV projection -> head-packed (3, B, T, D) slab ------------
# Weights stored as (3, D, D) and bias as (3, 1, D) so every BlockSpec keeps a
# (8,128)-legal last dim even when D < 128; the out_spec writes q/k/v directly
# into their attention layout -> zero XLA transposes per layer.

def _qkv_kernel(x_ref, w_ref, b_ref, o_ref, acc_ref):
    k = pl.program_id(2)

    @pl.when(k == 0)
    def _():
        acc_ref[...] = jnp.zeros_like(acc_ref)

    acc_ref[...] += jnp.dot(x_ref[...], w_ref[0],
                            preferred_element_type=jnp.float32)

    @pl.when(k == pl.num_programs(2) - 1)
    def _():
        y = acc_ref[...] + b_ref[0].astype(jnp.float32)
        o_ref[...] = y.reshape(o_ref.shape).astype(o_ref.dtype)


def qkv_projection(x2d, w_qkv3, b_qkv3, *, batch, seq,
                   block_m=256, block_n=256, block_k=512):
    M, K = x2d.shape                       # M = B*T, K = D
    Dm = w_qkv3.shape[2]
    tm = _pick_tile(seq, block_m, 8)       # row tile never crosses a batch
    tn = _pick_tile(Dm, block_n, 128)      # divides D; 128-aligned or == D
    tk = _pick_tile(K, block_k, 128)
    nqt = seq // tm                        # row tiles per batch element
    ncd = Dm // tn                         # column tiles per q/k/v matrix
    return pl.pallas_call(
        _qkv_kernel,
        out_shape=jax.ShapeDtypeStruct((3, batch, seq, Dm), jnp.bfloat16),
        grid=(M // tm, 3 * ncd, K // tk),
        in_specs=[
            pl.BlockSpec((tm, tk), lambda i, j, k: (i, k)),
            pl.BlockSpec((1, tk, tn), lambda i, j, k: (j // ncd, k, j % ncd)),
            pl.BlockSpec((1, 1, tn), lambda i, j, k: (j // ncd, 0, j % ncd)),
        ],
        out_specs=pl.BlockSpec(
            (1, 1, tm, tn),
            lambda i, j, k: (j // ncd, i // nqt, i % nqt, j % ncd)),
        scratch_shapes=[pltpu.VMEM((tm, tn), jnp.float32)],
        compiler_params=pltpu.CompilerParams(
            dimension_semantics=("parallel", "parallel", "arbitrary"),
            vmem_limit_bytes=_VMEM_LIMIT),
    )(x2d, w_qkv3, b_qkv3)


# --------------------------- flash causal attention --------------------------

def _heads_per_step(n_head, dh):
    """Smallest head-group making the lane dim a multiple of 128 (else all)."""
    for hs in range(1, n_head + 1):
        if n_head % hs == 0 and (hs * dh) % 128 == 0:
            return hs
    return n_head


def _flash_kernel(mask_ref, q_ref, k_ref, v_ref, o_ref, m_sc, l_sc, acc_sc,
                  *, scale, tq, tkv, hs, dh):
    qi = pl.program_id(2)
    ki = pl.program_id(3)

    @pl.when(ki == 0)
    def _():
        m_sc[...] = jnp.full_like(m_sc, -1e30)
        l_sc[...] = jnp.zeros_like(l_sc)
        acc_sc[...] = jnp.zeros_like(acc_sc)

    # Causal skip; the index_map clamp means skipped steps issue no new DMAs.
    @pl.when(ki * tkv < (qi + 1) * tq)
    def _():
        qall = q_ref[0, 0]                               # (tq,  hs*dh) bf16
        kall = k_ref[0, 0]                               # (tkv, hs*dh) bf16
        vall = v_ref[0, 0]                               # (tkv, hs*dh) bf16
        keep = mask_ref[...].reshape(1, tkv) > 0.5       # key padding mask
        rows = qi * tq + jax.lax.broadcasted_iota(jnp.int32, (tq, tkv), 0)
        cols = ki * tkv + jax.lax.broadcasted_iota(jnp.int32, (tq, tkv), 1)
        allowed = jnp.logical_and(cols <= rows, keep)
        for hh in range(hs):                             # static unroll
            qh = qall[:, hh * dh:(hh + 1) * dh]
            kh = kall[:, hh * dh:(hh + 1) * dh]
            vh = vall[:, hh * dh:(hh + 1) * dh]
            s = jax.lax.dot_general(
                qh, kh, (((1,), (1,)), ((), ())),
                preferred_element_type=jnp.float32) * scale
            s = jnp.where(allowed, s, -1e30)
            m_prev = m_sc[hh]
            m_new = jnp.maximum(m_prev, jnp.max(s, axis=-1, keepdims=True))
            alpha = jnp.exp(m_prev - m_new)
            p = jnp.exp(s - m_new)
            l_sc[hh] = alpha * l_sc[hh] + jnp.sum(p, axis=-1, keepdims=True)
            acc_sc[hh] = alpha * acc_sc[hh] + jnp.dot(
                p.astype(vh.dtype), vh, preferred_element_type=jnp.float32)
            m_sc[hh] = m_new

    @pl.when(ki == pl.num_programs(3) - 1)
    def _():
        # exact reciprocal (numerics-parity review item).  Fully-masked rows
        # fall back to a finite uniform average; the loss ignores them anyway.
        parts = [acc_sc[hh] / l_sc[hh] for hh in range(hs)]
        o_ref[0] = jnp.concatenate(parts, axis=-1).astype(o_ref.dtype)


def flash_attention(qkv3, key_mask, *, n_head, scale,
                    block_q=256, block_kv=256):
    """qkv3: (3, B, T, D) head-packed; key_mask: (B, 1, T) float. -> (B, T, D)."""
    _, B, T, D = qkv3.shape
    Dh = D // n_head
    hs = _heads_per_step(n_head, Dh)
    hsd = hs * Dh
    G = n_head // hs
    tq = _pick_tile(T, block_q, 8)
    tkv = _pick_tile(T, block_kv, 128)     # keep the lane axis 128-aligned

    def kclamp(qi, ki):                    # last kv tile this q tile needs
        return jnp.minimum(ki, ((qi + 1) * tq - 1) // tkv)

    kernel = functools.partial(_flash_kernel, scale=scale,
                               tq=tq, tkv=tkv, hs=hs, dh=Dh)
    # TODO(synk): move the kv loop inside the kernel (pltpu.emit_pipeline) to
    # also remove the per-skipped-tile grid-step overhead, not just its DMA.
    return pl.pallas_call(
        kernel,
        out_shape=jax.ShapeDtypeStruct((B, T, D), qkv3.dtype),
        grid=(B, G, T // tq, T // tkv),
        in_specs=[
            pl.BlockSpec((1, 1, tkv),
                         lambda b, g, qi, ki: (b, 0, kclamp(qi, ki))),
            pl.BlockSpec((1, 1, tq, hsd),
                         lambda b, g, qi, ki: (0, b, qi, g)),
            pl.BlockSpec((1, 1, tkv, hsd),
                         lambda b, g, qi, ki: (1, b, kclamp(qi, ki), g)),
            pl.BlockSpec((1, 1, tkv, hsd),
                         lambda b, g, qi, ki: (2, b, kclamp(qi, ki), g)),
        ],
        out_specs=pl.BlockSpec((1, tq, hsd), lambda b, g, qi, ki: (b, qi, g)),
        scratch_shapes=[pltpu.VMEM((hs, tq, 1), jnp.float32),
                        pltpu.VMEM((hs, tq, 1), jnp.float32),
                        pltpu.VMEM((hs, tq, Dh), jnp.float32)],
        compiler_params=pltpu.CompilerParams(
            dimension_semantics=("parallel", "parallel", "parallel",
                                 "arbitrary"),
            vmem_limit_bytes=_VMEM_LIMIT),
    )(key_mask, qkv3, qkv3, qkv3)


# ----------------- vocab-tiled cross-entropy (online logsumexp) --------------

def _ce_kernel(logits_ref, labels_ref, sum_ref, cnt_ref,
               m_sc, l_sc, lab_sc, *, tv):
    r = pl.program_id(1)
    vi = pl.program_id(2)

    @pl.when(jnp.logical_and(r == 0, vi == 0))
    def _():
        sum_ref[...] = jnp.zeros_like(sum_ref)
        cnt_ref[...] = jnp.zeros_like(cnt_ref)

    @pl.when(vi == 0)
    def _():
        m_sc[...] = jnp.full_like(m_sc, -1e30)
        l_sc[...] = jnp.zeros_like(l_sc)
        lab_sc[...] = jnp.zeros_like(lab_sc)

    logits = logits_ref[...].astype(jnp.float32)          # (tr, tv)
    labels = labels_ref[...]                               # (tr, 1) int32
    m_prev = m_sc[...]
    m_new = jnp.maximum(m_prev, jnp.max(logits, axis=-1, keepdims=True))
    l_sc[...] = l_sc[...] * jnp.exp(m_prev - m_new) + jnp.sum(
        jnp.exp(logits - m_new), axis=-1, keepdims=True)
    m_sc[...] = m_new
    vocab_ids = vi * tv + jax.lax.broadcasted_iota(jnp.int32, logits.shape, 1)
    lab_sc[...] += jnp.sum(jnp.where(vocab_ids == labels, logits, 0.0),
                           axis=-1, keepdims=True)

    @pl.when(vi == pl.num_programs(2) - 1)
    def _():
        lse = m_sc[...] + jnp.log(l_sc[...])
        valid = (labels != -100).astype(jnp.float32)       # HF ignore_index
        sum_ref[...] += jnp.sum((lse - lab_sc[...]) * valid)
        cnt_ref[...] += jnp.sum(valid)


def cross_entropy_mean(logits2d, labels2d, *, block_rows=256, block_vocab=2048):
    Nr, V = logits2d.shape
    tr = _pick_tile(Nr, block_rows, 8)
    tv = _pick_tile(V, block_vocab, 128)
    row_tiles = Nr // tr
    shards = 2 if row_tiles % 2 == 0 else 1    # 2-TC parallel shards on v7x
    rpt = row_tiles // shards
    kernel = functools.partial(_ce_kernel, tv=tv)
    s, c = pl.pallas_call(
        kernel,
        out_shape=(jax.ShapeDtypeStruct((8 * shards, 128), jnp.float32),
                   jax.ShapeDtypeStruct((8 * shards, 128), jnp.float32)),
        grid=(shards, rpt, V // tv),
        in_specs=[pl.BlockSpec((tr, tv), lambda sh, r, vi: (sh * rpt + r, vi)),
                  pl.BlockSpec((tr, 1), lambda sh, r, vi: (sh * rpt + r, 0))],
        out_specs=(pl.BlockSpec((8, 128), lambda sh, r, vi: (sh, 0)),
                   pl.BlockSpec((8, 128), lambda sh, r, vi: (sh, 0))),
        scratch_shapes=[pltpu.VMEM((tr, 1), jnp.float32),
                        pltpu.VMEM((tr, 1), jnp.float32),
                        pltpu.VMEM((tr, 1), jnp.float32)],
        compiler_params=pltpu.CompilerParams(
            dimension_semantics=("parallel", "arbitrary", "arbitrary"),
            vmem_limit_bytes=_VMEM_LIMIT),
    )(logits2d, labels2d.astype(jnp.int32))
    total = jnp.sum(s[::8, 0])
    count = jnp.sum(c[::8, 0])
    return total / jnp.maximum(count, 1.0)


# --------------------------------- model glue --------------------------------

def init_params(key, *, vocab, max_pos, d_model, n_layer, n_head, d_ff):
    del n_head
    std = 0.02
    wdt = jnp.bfloat16  # bf16 weights -> native MXU path
    keys = jax.random.split(key, 2 + 4 * n_layer)
    p = {
        "wte": (std * jax.random.normal(keys[0], (vocab, d_model))).astype(wdt),
        "wpe": (std * jax.random.normal(keys[1], (max_pos, d_model))).astype(wdt),
        "lnf_g": jnp.ones((d_model,), jnp.float32),
        "lnf_b": jnp.zeros((d_model,), jnp.float32),
        "blocks": [],
    }
    for l in range(n_layer):
        k = keys[2 + 4 * l: 2 + 4 * (l + 1)]
        p["blocks"].append({
            "ln1_g": jnp.ones((d_model,), jnp.float32),
            "ln1_b": jnp.zeros((d_model,), jnp.float32),
            # q/k/v weights stacked (3, D, D) so the QKV matmul can emit a
            # head-split (3, B, T, D) slab with (8,128)-legal BlockSpecs.
            "w_qkv": (std * jax.random.normal(
                k[0], (3, d_model, d_model))).astype(wdt),
            "b_qkv": jnp.zeros((3, 1, d_model), jnp.float32),
            "w_o": (std * jax.random.normal(k[1], (d_model, d_model))).astype(wdt),
            "b_o": jnp.zeros((d_model,), jnp.float32),
            "ln2_g": jnp.ones((d_model,), jnp.float32),
            "ln2_b": jnp.zeros((d_model,), jnp.float32),
            "w_fc": (std * jax.random.normal(k[2], (d_model, d_ff))).astype(wdt),
            "b_fc": jnp.zeros((d_ff,), jnp.float32),
            "w_proj": (std * jax.random.normal(k[3], (d_ff, d_model))).astype(wdt),
            "b_proj": jnp.zeros((d_model,), jnp.float32),
        })
    # lm_head tied to the token embedding; transposed ONCE at init.
    p["w_lm"] = p["wte"].T
    p["b_lm"] = jnp.zeros((vocab,), jnp.float32)
    return p


def tjd_hf_v2_forward(params, input_ids, attention_mask=None, labels=None,
                      *, n_head):
    """TJDHuggingFaceV2.forward == backbone(input_ids, attention_mask, labels)."""
    B, T = input_ids.shape
    V, D = params["wte"].shape
    Dh = D // n_head
    if attention_mask is None:
        attention_mask = jnp.ones((B, T), jnp.float32)
    key_mask = attention_mask.astype(jnp.float32).reshape(B, 1, T)

    # TODO(synk): embedding gather stays as XLA glue (data-dependent gather).
    x = (jnp.take(params["wte"], input_ids, axis=0)
         + params["wpe"][:T][None, :, :]).astype(jnp.bfloat16)
    x2 = x.reshape(B * T, D)

    blocks = params["blocks"]
    # First LN standalone; all later LNs are fused into the producing matmul.
    x_ln = layer_norm(x2, blocks[0]["ln1_g"], blocks[0]["ln1_b"])

    for li, blk in enumerate(blocks):
        # LN1(x) -> QKV, emitted directly as a head-packed (3, B, T, D) slab.
        qkv3 = qkv_projection(x_ln, blk["w_qkv"], blk["b_qkv"], batch=B, seq=T)
        attn = flash_attention(qkv3, key_mask, n_head=n_head,
                               scale=1.0 / (Dh ** 0.5))          # (B, T, D)
        # output projection: residual add + LN2 fused into the epilogue.
        x2, x_ln2 = fused_matmul(attn.reshape(B * T, D), blk["w_o"], blk["b_o"],
                                 residual=x2,
                                 emit_ln=(blk["ln2_g"], blk["ln2_b"]))
        # MLP: GELU fused; projection back fuses residual + the *next* LN
        # (next block's ln1, or the final lnf).
        h = fused_matmul(x_ln2, blk["w_fc"], blk["b_fc"], act="gelu")
        if li + 1 < len(blocks):
            nxt_ln = (blocks[li + 1]["ln1_g"], blocks[li + 1]["ln1_b"])
        else:
            nxt_ln = (params["lnf_g"], params["lnf_b"])
        x2, x_ln = fused_matmul(h, blk["w_proj"], blk["b_proj"],
                                residual=x2, emit_ln=nxt_ln)

    # lm_head on the lnf-normalized stream; bf16 logits (halves HBM traffic of
    # the largest tensor), big tiles, deeper weight streaming.
    logits2d = fused_matmul(x_ln, params["w_lm"], params["b_lm"],
                            out_dtype=jnp.bfloat16,
                            block_m=512, block_n=512, block_k=1024,
                            weight_buffers=3)
    logits = logits2d.reshape(B, T, V)

    loss = None
    if labels is not None:
        # HF causal-LM loss: token t predicts token t+1, ignore_index=-100.
        # The shift is applied to the (tiny) label tensor so the logits are
        # never sliced/copied.
        lab = labels.astype(jnp.int32)
        shifted = jnp.concatenate(
            [lab[:, 1:], jnp.full((B, 1), -100, jnp.int32)], axis=1)
        loss = cross_entropy_mean(logits2d, shifted.reshape(B * T, 1))

    return {"loss": loss, "logits": logits}


# ----------------------------------- driver ----------------------------------

if __name__ == "__main__":
    B, T = 2, 8
    VOCAB, MAX_POS = 64, 16
    D, N_HEAD, N_LAYER = 32, 2, 2
    D_FF = 4 * D

    key = jax.random.PRNGKey(0)
    pkey, ikey = jax.random.split(key)
    params = init_params(pkey, vocab=VOCAB, max_pos=MAX_POS, d_model=D,
                         n_layer=N_LAYER, n_head=N_HEAD, d_ff=D_FF)

    input_ids = jax.random.randint(ikey, (B, T), 0, VOCAB, dtype=jnp.int32)
    attention_mask = jnp.ones((B, T), jnp.float32)
    labels = input_ids  # standard LM training target (HF shifts internally)

    out = tjd_hf_v2_forward(params, input_ids, attention_mask, labels,
                            n_head=N_HEAD)
    logits = jax.block_until_ready(out["logits"])
    loss = jax.block_until_ready(out["loss"])

    assert logits.shape == (B, T, VOCAB)
    assert bool(jnp.isfinite(loss)) and bool(jnp.all(jnp.isfinite(logits)))
    print("KERNEL_OK")
</pallas_src>

<mosaic_0001>
module attributes {stable_mosaic.version = 11 : i64} {
  func.func @_ln_apply_kernel(%arg0: i32, %arg1: memref<16x32xbf16, #tpu.memory_space<vmem>>, %arg2: memref<1x32xf32, #tpu.memory_space<vmem>>, %arg3: memref<1x32xf32, #tpu.memory_space<vmem>>, %arg4: memref<16x32xbf16, #tpu.memory_space<vmem>>) attributes {dimension_semantics = [#tpu.dimension_semantics<parallel>], iteration_bounds = array<i64: 1>, scalar_prefetch = 0 : i64, scratch_operands = 0 : i64, tpu.core_type = #tpu.core_type<tc>, window_params = [{transform_indices = @transform_0, window_bounds = array<i64: 16, 32>}, {pipeline_mode = #tpu.pipeline_mode<synchronous>, transform_indices = @transform_1, window_bounds = array<i64: 1, 32>}, {pipeline_mode = #tpu.pipeline_mode<synchronous>, transform_indices = @transform_2, window_bounds = array<i64: 1, 32>}, {transform_indices = @transform_3, window_bounds = array<i64: 16, 32>}]} {
    %c0 = arith.constant 0 : index
    %c0_0 = arith.constant 0 : index
    %0 = vector.load %arg1[%c0, %c0_0] : memref<16x32xbf16, #tpu.memory_space<vmem>>, vector<16x32xbf16>
    %1 = arith.extf %0 : vector<16x32xbf16> to vector<16x32xf32>
    %cst = arith.constant dense<0.000000e+00> : vector<16xf32>
    %2 = vector.multi_reduction <add>, %1, %cst [1] : vector<16x32xf32> to vector<16xf32>
    %3 = vector.shape_cast %2 : vector<16xf32> to vector<16x1xf32>
    %cst_1 = arith.constant 3.200000e+01 : f32
    %4 = vector.broadcast %cst_1 : f32 to vector<16x1xf32>
    %5 = arith.divf %3, %4 : vector<16x1xf32>
    %6 = vector.broadcast %5 : vector<16x1xf32> to vector<16x32xf32>
    %7 = arith.subf %1, %6 : vector<16x32xf32>
    %8 = arith.mulf %7, %7 : vector<16x32xf32>
    %cst_2 = arith.constant dense<0.000000e+00> : vector<16xf32>
    %9 = vector.multi_reduction <add>, %8, %cst_2 [1] : vector<16x32xf32> to vector<16xf32>
    %10 = vector.shape_cast %9 : vector<16xf32> to vector<16x1xf32>
    %cst_3 = arith.constant 3.200000e+01 : f32
    %11 = vector.broadcast %cst_3 : f32 to vector<16x1xf32>
    %12 = arith.divf %10, %11 : vector<16x1xf32>
    %13 = vector.broadcast %5 : vector<16x1xf32> to vector<16x32xf32>
    %14 = arith.subf %1, %13 : vector<16x32xf32>
    %cst_4 = arith.constant 9.99999974E-6 : f32
    %15 = vector.broadcast %cst_4 : f32 to vector<16x1xf32>
    %16 = arith.addf %12, %15 : vector<16x1xf32>
    %17 = math.rsqrt %16 : vector<16x1xf32>
    %18 = vector.broadcast %17 : vector<16x1xf32> to vector<16x32xf32>
    %19 = arith.mulf %14, %18 : vector<16x32xf32>
    %c0_5 = arith.constant 0 : index
    %c0_6 = arith.constant 0 : index
    %20 = vector.load %arg2[%c0_5, %c0_6] : memref<1x32xf32, #tpu.memory_space<vmem>>, vector<1x32xf32>
    %21 = vector.broadcast %20 : vector<1x32xf32> to vector<16x32xf32>
    %22 = arith.mulf %19, %21 : vector<16x32xf32>
    %c0_7 = arith.constant 0 : index
    %c0_8 = arith.constant 0 : index
    %23 = vector.load %arg3[%c0_7, %c0_8] : memref<1x32xf32, #tpu.memory_space<vmem>>, vector<1x32xf32>
    %24 = vector.broadcast %23 : vector<1x32xf32> to vector<16x32xf32>
    %25 = arith.addf %22, %24 : vector<16x32xf32>
    %26 = arith.truncf %25 : vector<16x32xf32> to vector<16x32xbf16>
    %c0_9 = arith.constant 0 : index
    %c0_10 = arith.constant 0 : index
    %27 = vector.load %arg4[%c0_9, %c0_10] : memref<16x32xbf16, #tpu.memory_space<vmem>>, vector<16x32xbf16>
    tpu.vector_store %arg4[%c0_9, %c0_10], %26 {strides = array<i32>} : memref<16x32xbf16, #tpu.memory_space<vmem>>, vector<16x32xbf16>,
    return
  }
  func.func @transform_0(%arg0: i32) -> (i32, i32) {
    %c0_i32 = arith.constant 0 : i32
    %c0_i32_0 = arith.constant 0 : i32
    return %arg0, %c0_i32 : i32, i32
  }
  func.func @transform_1(%arg0: i32) -> (i32, i32) {
    %c0_i32 = arith.constant 0 : i32
    %c0_i32_0 = arith.constant 0 : i32
    %c0_i32_1 = arith.constant 0 : i32
    return %c0_i32, %c0_i32_0 : i32, i32
  }
  func.func @transform_2(%arg0: i32) -> (i32, i32) {
    %c0_i32 = arith.constant 0 : i32
    %c0_i32_0 = arith.constant 0 : i32
    %c0_i32_1 = arith.constant 0 : i32
    return %c0_i32, %c0_i32_0 : i32, i32
  }
  func.func @transform_3(%arg0: i32) -> (i32, i32) {
    %c0_i32 = arith.constant 0 : i32
    %c0_i32_0 = arith.constant 0 : i32
    return %arg0, %c0_i32 : i32, i32
  }
}

</mosaic_0001>

<bundles_post_ra>
// kernel: tpu_custom_call.1
= control target key start
LH: loop header
LB: loop body
LE: loop exit
PB: predicated region body
PF: predicated region fallthrough
CT: control target
= control target key end

     0   :  { %8 = vsyncpa [#allocation3], 0  ;;  %s237_s0 = inlined_call_operand.hbm [shape: bf16[16,32], index: 0, kind: input, shape index: {}]   ;;  %s238_s1 = inlined_call_operand.vmem [shape: f32[1,32], index: 1, kind: input, shape index: {}]   ;;  %s239_s2 = inlined_call_operand.vmem [shape: f32[1,32], index: 2, kind: input, shape index: {}]   ;;  %s240_s3 = inlined_call_operand.hbm [shape: bf16[16,32], index: 3, kind: output, shape index: {}]  }
   0x1   :  { %9 = vsyncpa [#allocation4], 0  ;;  %s173_s12 = smov [#allocation2]   ;;  %s125_s16 = scalar_lea.hbm %s237_s0, 128 }
   0x2   :  { %s15_s13 = sshll.u32 %s173_s12, 4  ;;  %p126_p0 = scmp.ne.s32.totalorder %s237_s0, %s125_s16  ;;  %s16_s13 = int_to_ptr.vmem [resolvable:$true] %s15_s13 }
   0x3   :  { %p129_p1 = scmp.lt.u32.totalorder %s125_s16, %s237_s0 }
   0x5   :  { %p131_p2 = pnand %p129_p1, %p126_p0 }
   0x7   :  { %134 = shalt.err (!%p131_p2)
}
   0x8   :  { %s135_s21 = scalar_lea.vmem %s16_s13, 128  ;;  %p140_p4 = scmp.lt.s32.totalorder %s16_s13, %s16_s13 }
   0x9   :  { %p136_p3 = scmp.ne.s32.totalorder %s16_s13, %s135_s21  ;;  %p141_p5 = scmp.lt.s32.totalorder %s135_s21, %s135_s21 }
   0xb   :  { %p142_p6 = por %p141_p5, %p140_p4 }
   0xd   :  { %p143_p7 = pnand %p142_p6, %p136_p3 }
   0xf   :  { %146 = shalt.err (!%p143_p7)
}
  0x10   :  { %s174_s22 = smov 64   ;;  %s175_s23 = smov 4  }
  0x11   :  { %21 = dma.hbm_to_vmem [thread:$0]  %s237_s0, 128, %s16_s13, [#allocation3], %s174_s22, %s174_s22, %s175_s23  }
  0x12   :  { %169 = dma.done.wait [#allocation3], 128  }
  0x13   :  { %170 = vsyncadd [#allocation3], 4294967168  ;;  %v114_v0 = vld [vmem:[#allocation2] sm:$0xff]   ;;  %vm33_vm0 = vcmask 261120   ;;  %vm87_vm1 = vcmask 257024   ;;  %s176_s29 = smov [#allocation5]  }
  0x14   :  { %v115_v1 = vunpack.c.l.bf16 %v114_v0  ;;  %v116_v2 = vunpack.c.h.bf16 %v114_v0  ;;  %v107_v22 = vld [vmem:[%s238_s1] ss:$0 sm:$0xff]  ;;  %s95_s30 = sshll.u32 %s176_s29, 4  ;;  %s96_s30 = int_to_ptr.vmem [resolvable:$true] %s95_s30 }
  0x15   :  { %v108_v24 = vld [vmem:[%s239_s2] ss:$0 sm:$0xff]  ;;  %s147_s1 = scalar_lea.vmem %s96_s30, 128  ;;  %p152_p9 = scmp.lt.s32.totalorder %s96_s30, %s96_s30 }
  0x16   :  { %v34_v3 = vsel %vm33_vm0, %v115_v1, 0.0  ;;  %v37_v4 = vsel %vm33_vm0, %v116_v2, 0.0  ;;  %p148_p8 = scmp.ne.s32.totalorder %s96_s30, %s147_s1  ;;  %p153_p10 = scmp.lt.s32.totalorder %s147_s1, %s147_s1 }
  0x17   :  { %35 = vadd.xlane.f32.xlu0 %v34_v3 }
  0x18   :  { %p154_p11 = por %p153_p10, %p152_p9 }
  0x1a   :  { %p155_p12 = pnand %p154_p11, %p148_p8 }
  0x1b   :  { %38 = vadd.xlane.f32.xlu0 %v37_v4 }
  0xa4   :  { %v36_v5 = vpop.xlane.xlu0 %35 }
  0xa5   :  { %v41_v6 = vmul.f32 0.03125, %v36_v5 }
  0xa7   :  { %v43_v7 = vsub.f32 %v115_v1, %v41_v6 }
  0xa8   :  { %v39_v8 = vpop.xlane.xlu0 %38 }
  0xa9   :  { %v42_v9 = vmul.f32 0.03125, %v39_v8  ;;  %v45_v10 = vmul.f32 %v43_v7, %v43_v7 }
  0xab   :  { %v44_v11 = vsub.f32 %v116_v2, %v42_v9  ;;  %v47_v12 = vsel %vm33_vm0, %v45_v10, 0.0 }
  0xac   :  { %48 = vadd.xlane.f32.xlu1 %v47_v12 }
  0xad   :  { %v46_v13 = vmul.f32 %v44_v11, %v44_v11 }
  0xaf   :  { %v50_v14 = vsel %vm33_vm0, %v46_v13, 0.0 }
  0xb0   :  { %51 = vadd.xlane.f32.xlu1 %v50_v14 }
 0x139   :  { %v49_v15 = vpop.xlane.xlu1 %48 }
 0x13a   :  { %v53_v16 = vmul.f32 0.03125, %v49_v15 }
 0x13c   :  { %v55_v17 = vadd.f32 1e-05, %v53_v16 }
 0x13d   :  { %v52_v18 = vpop.xlane.xlu1 %51 }
 0x13e   :  { %121 = vrsqrt.f32 %v55_v17  ;;  %v54_v19 = vmul.f32 0.03125, %v52_v18 }
 0x140   :  { %v56_v20 = vadd.f32 1e-05, %v54_v19 }
 0x142   :  { %123 = vrsqrt.f32 %v56_v20 }
 0x148   :  { %v122_v21 = vpop.eup %121 }
 0x149   :  { %v59_v23 = vmul.f32 %v122_v21, %v43_v7 }
 0x14b   :  { %v68_v25 = vmul.f32 %v107_v22, %v59_v23 }
 0x14c   :  { %v124_v26 = vpop.eup %123 }
 0x14d   :  { %v60_v27 = vmul.f32 %v124_v26, %v44_v11  ;;  %v77_v28 = vadd.f32 %v108_v24, %v68_v25 }
 0x14f   :  { %v69_v29 = vmul.f32 %v107_v22, %v60_v27  ;;  %v111_v30 = vpack.c.bf16 %v77_v28, %v77_v28 }
 0x151   :  { %v78_v31 = vadd.f32 %v108_v24, %v69_v29  ;;  %88 = vst.msk [vmem:[#allocation5] sm:$0xf] %vm87_vm1, %v111_v30 }
 0x153   :  { %v112_v32 = vpack.c.bf16 %v78_v31, %v78_v31 }
 0x155   :  { %89 = vst.msk [vmem:[#allocation5 + $0x4] sm:$0xf] %vm87_vm1, %v112_v32 }
 0x156   :  { %158 = shalt.err (!%p155_p12)
}
 0x157   :  { %s159_s5 = scalar_lea.hbm %s240_s3, 128 }
 0x158   :  { %p160_p13 = scmp.ne.s32.totalorder %s240_s3, %s159_s5  ;;  %p163_p0 = scmp.lt.u32.totalorder %s159_s5, %s240_s3 }
 0x15a   :  { %p165_p1 = pnand %p163_p0, %p160_p13 }
 0x15c   :  { %168 = shalt.err (!%p165_p1)
}
 0x15d   :  { %101 = dma.vmem_to_hbm [thread:$0]  %s96_s30, 128, %s240_s3, [#allocation4], %s174_s22, %s174_s22, %s175_s23  }
 0x15e   :  { %171 = dma.done.wait [#allocation4], 128  }
 0x15f   :  { %172 = vsyncadd [#allocation4], 4294967168 }
 0x160   :  { %105 = vsyncpa [#allocation3], 1 }
 0x161   :  { %106 = vsyncpa [#allocation4], 1 }

</bundles_post_ra>
